<compile_context>
chip_gen: v7x
topology: tpu7x:2x2x1
jax: 0.10.0
libtpu: 0.0.40
codegen_flags: <defaults>
</compile_context>

<pallas_src>
import jax
import jax.numpy as jnp
from jax.experimental import pallas as pl
from jax.experimental.pallas import tpu as pltpu


def _replicate_kernel(x_ref, o_ref):
    # x_ref: (nb, 1, tm)   o_ref: (nb, 3, tm)
    # One load, one sublane broadcast (1 -> 3), one full-block store.
    o_ref[...] = jnp.broadcast_to(x_ref[...], o_ref.shape)


def _vmem_budget_and_limit():
    """Per-generation VMEM tile budget and scoped limit (bytes)."""
    try:
        cap = int(pltpu.get_tpu_info().vmem_capacity_bytes)
    except Exception:
        cap = 64 * 1024 * 1024  # conservative fallback (v7x-sized VMEM)
    # ~3/8 of physical VMEM for the pipelined blocks, capped at 48 MiB;
    # scoped limit at half of physical VMEM, capped at 64 MiB.
    budget = max(8 << 20, min((3 * cap) // 8, 48 << 20))
    limit = max(16 << 20, min(cap // 2, 64 << 20))
    return budget, limit


def _choose_tiles(n, m, itemsize, vmem_budget):
    """Pick (nb, tm): batch rows per step and lane-tile of the flattened image."""
    # Sublane packing factor for the dtype (8 for 4-byte, 16 for 2-byte, ...).
    sublane = max(8, 32 // itemsize)
    # Per grid step: input block (nb,1,tm) and output block (nb,3,tm), each
    # double-buffered; both pad their sublane dim (1 -> sublane, 3 -> sublane).
    per_elem_vmem = 4 * sublane * itemsize
    budget_elems = max(128, vmem_budget // per_elem_vmem)
    if m <= budget_elems:
        tm = m                                             # full lane dim (always legal)
        nb = min(n, max(1, budget_elems // max(m, 1)))     # amortize ~0.35us/step
    else:
        tm = max(128, (budget_elems // 128) * 128)         # lane-dense 128-multiple
        nb = 1
    return nb, tm


def bw_to_rgb(x: jax.Array) -> jax.Array:
    """Pallas implementation of BWtoRGB.forward (NCHW, matching the PyTorch module)."""
    assert x.ndim == 4, "expected NCHW input"
    n, c, h, w = x.shape
    if c >= 3:
        # PyTorch returns the input unchanged; nothing to compute.
        return x

    m = c * h * w
    itemsize = jnp.dtype(x.dtype).itemsize
    vmem_budget, vmem_limit = _vmem_budget_and_limit()
    nb, tm = _choose_tiles(n, m, itemsize, vmem_budget)

    # v7x has 2 TensorCores: make sure a non-trivial problem yields >= 2
    # "parallel" blocks so both cores are used.
    total_bytes = n * m * itemsize
    if pl.cdiv(n, nb) * pl.cdiv(m, tm) == 1 and total_bytes >= (1 << 20):
        if n > 1:
            nb = pl.cdiv(n, 2)
        elif m >= 256:
            tm = ((pl.cdiv(m, 2) + 127) // 128) * 128
    grid = (pl.cdiv(n, nb), pl.cdiv(m, tm))

    # Zero-cost contiguous views:
    #   input  (N, 1, C*H*W)
    #   output (N, 3, C*H*W)  ==  (N, 3*C, H, W) after the final reshape,
    # which is exactly torch.cat([x, x, x], dim=1) in NCHW.
    x_flat = x.reshape(n, 1, m)

    out = pl.pallas_call(
        _replicate_kernel,
        out_shape=jax.ShapeDtypeStruct((n, 3, m), x.dtype),
        grid=grid,
        in_specs=[pl.BlockSpec((nb, 1, tm), lambda i, j: (i, 0, j))],
        out_specs=pl.BlockSpec((nb, 3, tm), lambda i, j: (i, 0, j)),
        compiler_params=pltpu.CompilerParams(
            dimension_semantics=("parallel", "parallel"),
            vmem_limit_bytes=vmem_limit,
        ),
        cost_estimate=pl.CostEstimate(
            flops=0,
            transcendentals=0,
            bytes_accessed=int(4 * x.size * itemsize),  # 1x read + 3x write
        ),
    )(x_flat)

    return out.reshape(n, 3 * c, h, w)


if __name__ == "__main__":
    key = jax.random.PRNGKey(0)
    k1, k2, k3, k4, k5 = jax.random.split(key, 5)

    # Case 1: grayscale input (C=1) -> kernel replicates channels to 3.
    x_bw = jax.random.normal(k1, (2, 1, 16, 16), dtype=jnp.float32)
    y_bw = jax.block_until_ready(bw_to_rgb(x_bw))
    ref_bw = jnp.concatenate([x_bw, x_bw, x_bw], axis=1)
    assert y_bw.shape == (2, 3, 16, 16)
    assert jnp.array_equal(y_bw, ref_bw)

    # Case 2: C=2 -> cat gives 6 channels (matches torch.cat semantics).
    x_2c = jax.random.normal(k2, (2, 2, 16, 16), dtype=jnp.float32)
    y_2c = jax.block_until_ready(bw_to_rgb(x_2c))
    ref_2c = jnp.concatenate([x_2c, x_2c, x_2c], axis=1)
    assert y_2c.shape == (2, 6, 16, 16)
    assert jnp.array_equal(y_2c, ref_2c)

    # Case 3: C>=3 -> identity pass-through.
    x_rgb = jax.random.normal(key, (2, 4, 16, 16), dtype=jnp.float32)
    y_rgb = jax.block_until_ready(bw_to_rgb(x_rgb))
    assert jnp.array_equal(y_rgb, x_rgb)

    # Case 4: image with a non-128-multiple flattened size (single block path).
    x_big = jax.random.normal(k3, (1, 1, 512, 384), dtype=jnp.float32)
    y_big = jax.block_until_ready(bw_to_rgb(x_big))
    ref_big = jnp.concatenate([x_big, x_big, x_big], axis=1)
    assert y_big.shape == (1, 3, 512, 384)
    assert jnp.array_equal(y_big, ref_big)

    # Case 5: >=1 MiB with N>1 -> exercises the >=2-block (megacore) guarantee.
    x_mc = jax.random.normal(k4, (2, 1, 128, 1024), dtype=jnp.float32)
    y_mc = jax.block_until_ready(bw_to_rgb(x_mc))
    ref_mc = jnp.concatenate([x_mc, x_mc, x_mc], axis=1)
    assert jnp.array_equal(y_mc, ref_mc)

    # Case 6: large single image -> lane-tiled path with a ragged last block.
    x_lg = jax.random.normal(k5, (1, 1, 1024, 640), dtype=jnp.float32)
    y_lg = jax.block_until_ready(bw_to_rgb(x_lg))
    ref_lg = jnp.concatenate([x_lg, x_lg, x_lg], axis=1)
    assert jnp.array_equal(y_lg, ref_lg)

    print("KERNEL_OK")
</pallas_src>

<mosaic_0001>
module attributes {stable_mosaic.version = 11 : i64} {
  func.func @_replicate_kernel(%arg0: i32, %arg1: i32, %arg2: memref<2x1x256xf32, #tpu.memory_space<vmem>>, %arg3: memref<2x3x256xf32, #tpu.memory_space<vmem>>) attributes {dimension_semantics = [#tpu.dimension_semantics<parallel>, #tpu.dimension_semantics<parallel>], iteration_bounds = array<i64: 1, 1>, scalar_prefetch = 0 : i64, scratch_operands = 0 : i64, tpu.core_type = #tpu.core_type<tc>, window_params = [{transform_indices = @transform_0, window_bounds = array<i64: 2, 1, 256>}, {transform_indices = @transform_1, window_bounds = array<i64: 2, 3, 256>}]} {
    %c0 = arith.constant 0 : index
    %c0_0 = arith.constant 0 : index
    %c0_1 = arith.constant 0 : index
    %0 = vector.load %arg2[%c0, %c0_0, %c0_1] : memref<2x1x256xf32, #tpu.memory_space<vmem>>, vector<2x1x256xf32>
    %1 = vector.shape_cast %0 : vector<2x1x256xf32> to vector<2x1x256xf32>
    %2 = vector.broadcast %1 : vector<2x1x256xf32> to vector<2x3x256xf32>
    %c0_2 = arith.constant 0 : index
    %c0_3 = arith.constant 0 : index
    %c0_4 = arith.constant 0 : index
    %3 = vector.load %arg3[%c0_2, %c0_3, %c0_4] : memref<2x3x256xf32, #tpu.memory_space<vmem>>, vector<2x3x256xf32>
    tpu.vector_store %arg3[%c0_2, %c0_3, %c0_4], %2 {strides = array<i32>} : memref<2x3x256xf32, #tpu.memory_space<vmem>>, vector<2x3x256xf32>,
    return
  }
  func.func @transform_0(%arg0: i32, %arg1: i32) -> (i32, i32, i32) {
    %c0_i32 = arith.constant 0 : i32
    %c0_i32_0 = arith.constant 0 : i32
    return %arg0, %c0_i32, %arg1 : i32, i32, i32
  }
  func.func @transform_1(%arg0: i32, %arg1: i32) -> (i32, i32, i32) {
    %c0_i32 = arith.constant 0 : i32
    %c0_i32_0 = arith.constant 0 : i32
    return %arg0, %c0_i32, %arg1 : i32, i32, i32
  }
}

</mosaic_0001>

<bundles_post_ra>
// kernel: tpu_custom_call.1
= control target key start
LH: loop header
LB: loop body
LE: loop exit
PB: predicated region body
PF: predicated region fallthrough
CT: control target
= control target key end

     0   :  { %6 = vsyncpa [#allocation3], 0  ;;  %s80_s6 = smov [#allocation2]   ;;  %s111_s0 = inlined_call_operand.hbm [shape: f32[2,1,256], index: 0, kind: input, shape index: {}]   ;;  %s112_s1 = inlined_call_operand.vmem [shape: f32[2,3,256], index: 1, kind: output, shape index: {}]  }
   0x1   :  { %s12_s7 = sshll.u32 %s80_s6, 4  ;;  %s56_s10 = scalar_lea.hbm %s111_s0, 64  ;;  %s13_s7 = int_to_ptr.vmem [resolvable:$true] %s12_s7 }
   0x2   :  { %p57_p0 = scmp.ne.s32.totalorder %s111_s0, %s56_s10  ;;  %p60_p1 = scmp.lt.u32.totalorder %s56_s10, %s111_s0 }
   0x4   :  { %p62_p2 = pnand %p60_p1, %p57_p0 }
   0x6   :  { %65 = shalt.err (!%p62_p2)
}
   0x7   :  { %s66_s15 = scalar_lea.vmem %s13_s7, 64  ;;  %p71_p4 = scmp.lt.s32.totalorder %s13_s7, %s13_s7 }
   0x8   :  { %p67_p3 = scmp.ne.s32.totalorder %s13_s7, %s66_s15  ;;  %p72_p5 = scmp.lt.s32.totalorder %s66_s15, %s66_s15 }
   0xa   :  { %p73_p6 = por %p72_p5, %p71_p4 }
   0xc   :  { %p74_p7 = pnand %p73_p6, %p67_p3 }
   0xe   :  { %77 = shalt.err (!%p74_p7)
}
   0xf   :  { %s81_s16 = smov 32   ;;  %s82_s17 = smov 2  }
  0x10   :  { %18 = dma.hbm_to_vmem [thread:$0]  %s111_s0, 64, %s13_s7, [#allocation3], %s81_s16, %s81_s16, %s82_s17  }
  0x11   :  { %78 = dma.done.wait [#allocation3], 64  }
  0x12   :  { %79 = vsyncadd [#allocation3], 4294967232  ;;  %v26_v0 = vlaneseq  ;;  %v22_v4 = vld [vmem:[#allocation2] sm:$0x3]  ;;  %v23_v5 = vld [vmem:[#allocation2 + $0x2] sm:$0x3] }
  0x14   :  { %v27_v1 = vshrl.u32 %v26_v0, 7 }
  0x16   :  { %v28_v2 = vsub.s32 0, %v27_v1  ;;  %v32_v3 = vsub.s32 1, %v27_v1 }
  0x18   :  { %v29_v6 = vrot.slane %v22_v4, %v28_v2  ;;  %v33_v7 = vrot.slane %v22_v4, %v32_v3  ;;  %v37_v8 = vrot.slane %v23_v5, %v28_v2  ;;  %v41_v9 = vrot.slane %v23_v5, %v32_v3 }
  0x1a   :  { %v42_v10 = vcombine.low %v29_v6, %v33_v7  ;;  %v43_v11 = vcombine.low %v37_v8, %v41_v9 }
  0x1c   :  { %46 = vst [vmem:[%s112_s1] sm:$0x77] %v42_v10  ;;  %47 = vst [vmem:[%s112_s1 + $0x8] sm:$0x77] %v43_v11 }
  0x1d   :  { %52 = vsyncpa [#allocation3], 1 }

</bundles_post_ra>
